<compile_context>
chip_gen: v6e
topology: v6e:2x2x1
jax: 0.10.0
libtpu: 0.0.40
codegen_flags: <defaults>
</compile_context>

<pallas_src>
import numpy as np
import jax
import jax.numpy as jnp
from jax.experimental import pallas as pl
from jax.experimental.pallas import tpu as pltpu

try:  # prefer the C implementation of the assignment when present
    from scipy.optimize import linear_sum_assignment as _scipy_lsa
except Exception:  # pragma: no cover
    _scipy_lsa = None


def _round_up(x: int, m: int) -> int:
    return ((x + m - 1) // m) * m


def _cdiv(a: int, b: int) -> int:
    return (a + b - 1) // b


def make_cost_matrix_fn(cost_class=1.0, cost_bbox=1.0, cost_giou=1.0,
                        out_dtype=jnp.float32):
    """Returns a jitted fn: (logits[B,Q,C], boxes[B,Q,4], tgt_boxes[B,Tp,4],
    tgt_labels[B,Tp]) -> padded cost matrix [B, Q_pad, T_pad]."""
    assert cost_class != 0 or cost_bbox != 0 or cost_giou != 0, "all costs cant be 0"
    cost_class = float(cost_class)
    cost_bbox = float(cost_bbox)
    cost_giou = float(cost_giou)

    def _cost(logits, boxes, tgt_boxes_pad, tgt_labels_pad):
        B, Q, C = logits.shape
        T_pad = tgt_boxes_pad.shape[1]          # multiple of 128 (bucketed by caller)
        CW = C + 4

        # Grid sizing: aim for >=4 total grid steps (>=2 per TensorCore on v7x) when the
        # batch alone doesn't provide them; each extra step costs only ~0.35 us.
        desired_splits = max(1, _cdiv(4, B))
        tile_q = min(512, max(8, _round_up(_cdiv(Q, desired_splits), 8)))
        Q_pad = _round_up(Q, tile_q)

        def kernel(feats_ref, tgt_t_ref, onehot_ref, out_ref):
            feats = feats_ref[...]                                  # [TQ, C+4] f32
            logits_t = feats[:, :C]

            # ---- class cost: softmax (exact recip on the tiny [TQ,1] denom) +
            #      one-hot gather as an MXU matmul with -cost_class pre-folded ----
            m = jnp.max(logits_t, axis=-1, keepdims=True)
            e = jnp.exp(logits_t - m)
            inv_den = 1.0 / jnp.sum(e, axis=-1, keepdims=True)
            prob = e * inv_den                                      # [TQ, C]
            c_class = jnp.dot(prob.astype(jnp.bfloat16), onehot_ref[...],
                              preferred_element_type=jnp.float32)   # [TQ, Tp]

            # ---- hoisted per-target quantities ([1, Tp]) ----
            tbt = tgt_t_ref[...]                                    # [4, Tp]
            tcx, tcy, tw, th = tbt[0:1, :], tbt[1:2, :], tbt[2:3, :], tbt[3:4, :]
            tx0, ty0 = tcx - 0.5 * tw, tcy - 0.5 * th
            tx1, ty1 = tcx + 0.5 * tw, tcy + 0.5 * th
            area_t = tw * th

            # ---- hoisted per-prediction quantities ([TQ, 1]) ----
            ob = feats[:, C:]                                       # [TQ, 4]
            ocx, ocy, ow, oh = ob[:, 0:1], ob[:, 1:2], ob[:, 2:3], ob[:, 3:4]
            ox0, oy0 = ocx - 0.5 * ow, ocy - 0.5 * oh
            ox1, oy1 = ocx + 0.5 * ow, ocy + 0.5 * oh
            area_o = ow * oh

            # ---- L1 cdist; non-unit weight folded into the hoisted coords ----
            if cost_bbox == 1.0:
                c_bbox = (jnp.abs(ocx - tcx) + jnp.abs(ocy - tcy)
                          + jnp.abs(ow - tw) + jnp.abs(oh - th))
            elif cost_bbox > 0.0:
                wb = cost_bbox
                c_bbox = (jnp.abs(wb * ocx - wb * tcx) + jnp.abs(wb * ocy - wb * tcy)
                          + jnp.abs(wb * ow - wb * tw) + jnp.abs(wb * oh - wb * th))
            else:
                c_bbox = cost_bbox * (jnp.abs(ocx - tcx) + jnp.abs(ocy - tcy)
                                      + jnp.abs(ow - tw) + jnp.abs(oh - th))

            # ---- generalized IoU (divisions on the EUP via approx reciprocal) ----
            iw = jnp.maximum(jnp.minimum(ox1, tx1) - jnp.maximum(ox0, tx0), 0.0)
            ih = jnp.maximum(jnp.minimum(oy1, ty1) - jnp.maximum(oy0, ty0), 0.0)
            inter = iw * ih                                         # [TQ, Tp]
            union = area_o + area_t - inter
            iou = inter * pl.reciprocal(union, approx=True)
            # enclosing width/height >= 0 for well-formed boxes: no clamp needed
            ew = jnp.maximum(ox1, tx1) - jnp.minimum(ox0, tx0)
            eh = jnp.maximum(oy1, ty1) - jnp.minimum(oy0, ty0)
            giou = iou - 1.0 + union * pl.reciprocal(ew * eh, approx=True)

            total = c_class + c_bbox                                # c_class has -cost_class
            total = total - (giou if cost_giou == 1.0 else cost_giou * giou)
            out_ref[...] = total.astype(out_ref.dtype)

        # ---- prep, fused with the pallas_call under the surrounding jit ----
        feats = jnp.concatenate([logits.astype(jnp.float32),
                                 boxes.astype(jnp.float32)], axis=-1)   # [B, Q, C+4]
        if Q_pad > Q:
            pad_row = jnp.concatenate([jnp.zeros((C,), jnp.float32),
                                       jnp.array([0.5, 0.5, 1.0, 1.0], jnp.float32)])
            feats = jnp.concatenate(
                [feats, jnp.broadcast_to(pad_row, (B, Q_pad - Q, CW))], axis=1)

        tgt_t = jnp.swapaxes(tgt_boxes_pad.astype(jnp.float32), 1, 2)    # [B, 4, Tp]
        # padded labels are -1 -> all-zero one-hot columns; -cost_class folded, bf16 exact
        onehot_t = jnp.swapaxes(
            (jax.nn.one_hot(tgt_labels_pad, C, dtype=jnp.float32)
             * (-cost_class)).astype(jnp.bfloat16), 1, 2)                # [B, C, Tp]

        # Per-step VMEM footprint (double-buffered tiles + temporaries) is well under the
        # 32 MiB scoped default on all of v5e/v6e/v7x at these sizes.
        return pl.pallas_call(
            kernel,
            grid=(B, Q_pad // tile_q),
            in_specs=[
                pl.BlockSpec((None, tile_q, CW), lambda b, i: (b, i, 0)),
                pl.BlockSpec((None, 4, T_pad), lambda b, i: (b, 0, 0)),
                pl.BlockSpec((None, C, T_pad), lambda b, i: (b, 0, 0)),
            ],
            out_specs=pl.BlockSpec((None, tile_q, T_pad), lambda b, i: (b, i, 0)),
            out_shape=jax.ShapeDtypeStruct((B, Q_pad, T_pad), out_dtype),
            compiler_params=pltpu.CompilerParams(
                dimension_semantics=("parallel", "parallel")),
        )(feats, tgt_t, onehot_t)

    return jax.jit(_cost)


# TODO(synk): linear_sum_assignment (Hungarian) is inherently sequential / data-dependent
# and has no clean Pallas equivalent; it runs on host (scipy if available, NumPy fallback).
def _lsa_fallback(cost):
    """Shortest-augmenting-path Hungarian for a rectangular cost matrix (numpy)."""
    cost = np.asarray(cost, dtype=np.float64)
    transposed = False
    if cost.shape[0] > cost.shape[1]:
        cost = cost.T
        transposed = True
    n, m = cost.shape  # n <= m
    INF = float("inf")
    u = [0.0] * (n + 1)
    v = [0.0] * (m + 1)
    p = [0] * (m + 1)
    way = [0] * (m + 1)
    for i in range(1, n + 1):
        p[0] = i
        j0 = 0
        minv = [INF] * (m + 1)
        used = [False] * (m + 1)
        while True:
            used[j0] = True
            i0 = p[j0]
            delta = INF
            j1 = 0
            for j in range(1, m + 1):
                if not used[j]:
                    cur = cost[i0 - 1, j - 1] - u[i0] - v[j]
                    if cur < minv[j]:
                        minv[j] = cur
                        way[j] = j0
                    if minv[j] < delta:
                        delta = minv[j]
                        j1 = j
            for j in range(m + 1):
                if used[j]:
                    u[p[j]] += delta
                    v[j] -= delta
                else:
                    minv[j] -= delta
            j0 = j1
            if p[j0] == 0:
                break
        while True:
            j1 = way[j0]
            p[j0] = p[j1]
            j0 = j1
            if j0 == 0:
                break
    rows, cols = [], []
    for j in range(1, m + 1):
        if p[j] != 0:
            rows.append(p[j] - 1)
            cols.append(j - 1)
    rows = np.asarray(rows, dtype=np.int64)
    cols = np.asarray(cols, dtype=np.int64)
    if transposed:
        rows, cols = cols, rows
    order = np.argsort(rows)
    return rows[order], cols[order]


def _linear_sum_assignment(cost):
    if _scipy_lsa is not None:
        r, c = _scipy_lsa(np.asarray(cost, dtype=np.float64))
        return np.asarray(r, np.int64), np.asarray(c, np.int64)
    return _lsa_fallback(cost)


class HungarianMatcher:
    def __init__(self, cost_class: float = 1.0, cost_bbox: float = 1.0,
                 cost_giou: float = 1.0, cost_dtype=jnp.float32):
        # cost_dtype=jnp.bfloat16 halves the output store / D2H traffic (useful on v5e),
        # at the price of ~1e-3-level perturbation of the cost values.
        self._cost_fn = make_cost_matrix_fn(cost_class, cost_bbox, cost_giou,
                                            out_dtype=cost_dtype)

    def __call__(self, outputs, targets):
        logits = outputs["pred_logits"]   # [B, Q, C]
        boxes = outputs["pred_boxes"]     # [B, Q, 4]
        B, Q, C = logits.shape

        sizes = [int(np.asarray(t["boxes"]).shape[0]) for t in targets]
        if sum(sizes) == 0:
            empty = np.zeros((0,), np.int64)
            return [(empty.copy(), empty.copy()) for _ in range(B)]

        # Bucket T_pad to multiples of 128: lane-dense output columns + few recompiles.
        T_pad = _round_up(max(max(sizes), 1), 128)

        tgt_boxes_pad = np.tile(np.array([0.5, 0.5, 1.0, 1.0], np.float32),
                                (B, T_pad, 1))
        tgt_labels_pad = np.full((B, T_pad), -1, np.int32)
        for b, t in enumerate(targets):
            nb = sizes[b]
            if nb:
                tgt_boxes_pad[b, :nb] = np.asarray(t["boxes"], np.float32)
                tgt_labels_pad[b, :nb] = np.asarray(t["labels"], np.int32)

        cost = self._cost_fn(logits, boxes, tgt_boxes_pad, tgt_labels_pad)
        cost = jax.block_until_ready(cost)
        # Padded [B, Q_pad, T_pad] comes back; index only the valid region on host.
        cost_np = np.asarray(cost, dtype=np.float64)

        indices = []
        for b, nb in enumerate(sizes):
            sub = cost_np[b, :Q, :nb]
            rows, cols = _linear_sum_assignment(sub)
            indices.append((np.asarray(rows, np.int64), np.asarray(cols, np.int64)))
        return indices


if __name__ == "__main__":
    B, Q, NUM_CLASSES = 2, 8, 16
    key = jax.random.PRNGKey(0)
    k1, k2, k3, k4, k5, k6 = jax.random.split(key, 6)

    pred_logits = jax.random.normal(k1, (B, Q, NUM_CLASSES), dtype=jnp.float32)
    # predicted boxes: cxcywh with positive sizes
    pred_cxcy = jax.random.uniform(k2, (B, Q, 2), minval=0.2, maxval=0.8)
    pred_wh = jax.random.uniform(k3, (B, Q, 2), minval=0.1, maxval=0.3)
    pred_boxes = jnp.concatenate([pred_cxcy, pred_wh], axis=-1).astype(jnp.float32)

    sizes = [3, 4]
    labels0 = jax.random.randint(k4, (sizes[0],), 0, NUM_CLASSES)
    labels1 = jax.random.randint(k5, (sizes[1],), 0, NUM_CLASSES)
    tgt_cxcy = jax.random.uniform(k6, (sum(sizes), 2), minval=0.2, maxval=0.8)
    tgt_wh = jax.random.uniform(jax.random.fold_in(k6, 1), (sum(sizes), 2),
                                minval=0.1, maxval=0.3)
    tgt_boxes = jnp.concatenate([tgt_cxcy, tgt_wh], axis=-1).astype(jnp.float32)

    targets = [
        {"labels": labels0, "boxes": tgt_boxes[:sizes[0]]},
        {"labels": labels1, "boxes": tgt_boxes[sizes[0]:]},
    ]
    outputs = {"pred_logits": pred_logits, "pred_boxes": pred_boxes}

    matcher = HungarianMatcher(cost_class=1.0, cost_bbox=1.0, cost_giou=1.0)
    indices = matcher(outputs, targets)

    # sanity: one match per target box, correct cardinality, in-range indices
    for (ri, cj), s in zip(indices, sizes):
        assert len(ri) == len(cj) == min(Q, s)
        assert ri.max(initial=-1) < Q and cj.max(initial=-1) < s

    print("KERNEL_OK")
</pallas_src>

<mosaic_0001>
module attributes {stable_mosaic.version = 11 : i64} {
  func.func @kernel(%arg0: i32, %arg1: i32, %arg2: memref<1x8x20xf32, #tpu.memory_space<vmem>>, %arg3: memref<1x4x128xf32, #tpu.memory_space<vmem>>, %arg4: memref<1x16x128xbf16, #tpu.memory_space<vmem>>, %arg5: memref<1x8x128xf32, #tpu.memory_space<vmem>>) attributes {dimension_semantics = [#tpu.dimension_semantics<parallel>, #tpu.dimension_semantics<parallel>], iteration_bounds = array<i64: 2, 1>, scalar_prefetch = 0 : i64, scratch_operands = 0 : i64, tpu.core_type = #tpu.core_type<tc>, window_params = [{transform_indices = @transform_0, window_bounds = array<i64: 1, 8, 20>}, {transform_indices = @transform_1, window_bounds = array<i64: 1, 4, 128>}, {transform_indices = @transform_2, window_bounds = array<i64: 1, 16, 128>}, {transform_indices = @transform_3, window_bounds = array<i64: 1, 8, 128>}]} {
    %c0 = arith.constant 0 : index
    %c0_0 = arith.constant 0 : index
    %c0_1 = arith.constant 0 : index
    %0 = vector.load %arg2[%c0, %c0_0, %c0_1] : memref<1x8x20xf32, #tpu.memory_space<vmem>>, vector<1x8x20xf32>
    %1 = vector.shape_cast %0 : vector<1x8x20xf32> to vector<8x20xf32>
    %2 = vector.extract_strided_slice %1 {offsets = [0, 0], sizes = [8, 16], strides = [1, 1]} : vector<8x20xf32> to vector<8x16xf32>
    %cst = arith.constant dense<0xFF800000> : vector<8xf32>
    %3 = vector.multi_reduction <maximumf>, %2, %cst [1] : vector<8x16xf32> to vector<8xf32>
    %4 = vector.shape_cast %3 : vector<8xf32> to vector<8x1xf32>
    %5 = vector.broadcast %4 : vector<8x1xf32> to vector<8x16xf32>
    %6 = arith.subf %2, %5 : vector<8x16xf32>
    %7 = math.exp %6 : vector<8x16xf32>
    %cst_2 = arith.constant dense<0.000000e+00> : vector<8xf32>
    %8 = vector.multi_reduction <add>, %7, %cst_2 [1] : vector<8x16xf32> to vector<8xf32>
    %9 = vector.shape_cast %8 : vector<8xf32> to vector<8x1xf32>
    %cst_3 = arith.constant 1.000000e+00 : f32
    %10 = vector.broadcast %cst_3 : f32 to vector<8x1xf32>
    %11 = arith.divf %10, %9 : vector<8x1xf32>
    %12 = vector.broadcast %11 : vector<8x1xf32> to vector<8x16xf32>
    %13 = arith.mulf %7, %12 : vector<8x16xf32>
    %14 = arith.truncf %13 : vector<8x16xf32> to vector<8x16xbf16>
    %c0_4 = arith.constant 0 : index
    %c0_5 = arith.constant 0 : index
    %c0_6 = arith.constant 0 : index
    %15 = vector.load %arg4[%c0_4, %c0_5, %c0_6] : memref<1x16x128xbf16, #tpu.memory_space<vmem>>, vector<1x16x128xbf16>
    %16 = vector.shape_cast %15 : vector<1x16x128xbf16> to vector<16x128xbf16>
    %cst_7 = arith.constant dense<0.000000e+00> : vector<8x128xf32>
    %17 = tpu.matmul %14, %16, %cst_7 {dimension_numbers = #tpu.dot_dimension_numbers<[1], [0], [0], [1], [0, 0, 1, 1], [], []>} : vector<8x16xbf16>, vector<16x128xbf16>, vector<8x128xf32> -> vector<8x128xf32>
    %c0_8 = arith.constant 0 : index
    %c0_9 = arith.constant 0 : index
    %c0_10 = arith.constant 0 : index
    %18 = vector.load %arg3[%c0_8, %c0_9, %c0_10] : memref<1x4x128xf32, #tpu.memory_space<vmem>>, vector<1x4x128xf32>
    %19 = vector.shape_cast %18 : vector<1x4x128xf32> to vector<4x128xf32>
    %20 = vector.extract_strided_slice %19 {offsets = [0, 0], sizes = [1, 128], strides = [1, 1]} : vector<4x128xf32> to vector<1x128xf32>
    %21 = vector.extract_strided_slice %19 {offsets = [1, 0], sizes = [1, 128], strides = [1, 1]} : vector<4x128xf32> to vector<1x128xf32>
    %22 = vector.extract_strided_slice %19 {offsets = [2, 0], sizes = [1, 128], strides = [1, 1]} : vector<4x128xf32> to vector<1x128xf32>
    %23 = vector.extract_strided_slice %19 {offsets = [3, 0], sizes = [1, 128], strides = [1, 1]} : vector<4x128xf32> to vector<1x128xf32>
    %cst_11 = arith.constant 5.000000e-01 : f32
    %24 = vector.broadcast %cst_11 : f32 to vector<1x128xf32>
    %25 = arith.mulf %24, %22 : vector<1x128xf32>
    %26 = arith.subf %20, %25 : vector<1x128xf32>
    %cst_12 = arith.constant 5.000000e-01 : f32
    %27 = vector.broadcast %cst_12 : f32 to vector<1x128xf32>
    %28 = arith.mulf %27, %23 : vector<1x128xf32>
    %29 = arith.subf %21, %28 : vector<1x128xf32>
    %cst_13 = arith.constant 5.000000e-01 : f32
    %30 = vector.broadcast %cst_13 : f32 to vector<1x128xf32>
    %31 = arith.mulf %30, %22 : vector<1x128xf32>
    %32 = arith.addf %20, %31 : vector<1x128xf32>
    %cst_14 = arith.constant 5.000000e-01 : f32
    %33 = vector.broadcast %cst_14 : f32 to vector<1x128xf32>
    %34 = arith.mulf %33, %23 : vector<1x128xf32>
    %35 = arith.addf %21, %34 : vector<1x128xf32>
    %36 = arith.mulf %22, %23 : vector<1x128xf32>
    %37 = vector.extract_strided_slice %1 {offsets = [0, 16], sizes = [8, 4], strides = [1, 1]} : vector<8x20xf32> to vector<8x4xf32>
    %38 = vector.extract_strided_slice %37 {offsets = [0, 0], sizes = [8, 1], strides = [1, 1]} : vector<8x4xf32> to vector<8x1xf32>
    %39 = vector.extract_strided_slice %37 {offsets = [0, 1], sizes = [8, 1], strides = [1, 1]} : vector<8x4xf32> to vector<8x1xf32>
    %40 = vector.extract_strided_slice %37 {offsets = [0, 2], sizes = [8, 1], strides = [1, 1]} : vector<8x4xf32> to vector<8x1xf32>
    %41 = vector.extract_strided_slice %37 {offsets = [0, 3], sizes = [8, 1], strides = [1, 1]} : vector<8x4xf32> to vector<8x1xf32>
    %cst_15 = arith.constant 5.000000e-01 : f32
    %42 = vector.broadcast %cst_15 : f32 to vector<8x1xf32>
    %43 = arith.mulf %42, %40 : vector<8x1xf32>
    %44 = arith.subf %38, %43 : vector<8x1xf32>
    %cst_16 = arith.constant 5.000000e-01 : f32
    %45 = vector.broadcast %cst_16 : f32 to vector<8x1xf32>
    %46 = arith.mulf %45, %41 : vector<8x1xf32>
    %47 = arith.subf %39, %46 : vector<8x1xf32>
    %cst_17 = arith.constant 5.000000e-01 : f32
    %48 = vector.broadcast %cst_17 : f32 to vector<8x1xf32>
    %49 = arith.mulf %48, %40 : vector<8x1xf32>
    %50 = arith.addf %38, %49 : vector<8x1xf32>
    %cst_18 = arith.constant 5.000000e-01 : f32
    %51 = vector.broadcast %cst_18 : f32 to vector<8x1xf32>
    %52 = arith.mulf %51, %41 : vector<8x1xf32>
    %53 = arith.addf %39, %52 : vector<8x1xf32>
    %54 = arith.mulf %40, %41 : vector<8x1xf32>
    %55 = vector.broadcast %38 : vector<8x1xf32> to vector<8x128xf32>
    %56 = vector.broadcast %20 : vector<1x128xf32> to vector<8x128xf32>
    %57 = arith.subf %55, %56 : vector<8x128xf32>
    %58 = math.absf %57 : vector<8x128xf32>
    %59 = vector.broadcast %39 : vector<8x1xf32> to vector<8x128xf32>
    %60 = vector.broadcast %21 : vector<1x128xf32> to vector<8x128xf32>
    %61 = arith.subf %59, %60 : vector<8x128xf32>
    %62 = math.absf %61 : vector<8x128xf32>
    %63 = arith.addf %58, %62 : vector<8x128xf32>
    %64 = vector.broadcast %40 : vector<8x1xf32> to vector<8x128xf32>
    %65 = vector.broadcast %22 : vector<1x128xf32> to vector<8x128xf32>
    %66 = arith.subf %64, %65 : vector<8x128xf32>
    %67 = math.absf %66 : vector<8x128xf32>
    %68 = arith.addf %63, %67 : vector<8x128xf32>
    %69 = vector.broadcast %41 : vector<8x1xf32> to vector<8x128xf32>
    %70 = vector.broadcast %23 : vector<1x128xf32> to vector<8x128xf32>
    %71 = arith.subf %69, %70 : vector<8x128xf32>
    %72 = math.absf %71 : vector<8x128xf32>
    %73 = arith.addf %68, %72 : vector<8x128xf32>
    %74 = vector.broadcast %50 : vector<8x1xf32> to vector<8x128xf32>
    %75 = vector.broadcast %32 : vector<1x128xf32> to vector<8x128xf32>
    %76 = arith.minimumf %74, %75 : vector<8x128xf32>
    %77 = vector.broadcast %44 : vector<8x1xf32> to vector<8x128xf32>
    %78 = vector.broadcast %26 : vector<1x128xf32> to vector<8x128xf32>
    %79 = arith.maximumf %77, %78 : vector<8x128xf32>
    %80 = arith.subf %76, %79 : vector<8x128xf32>
    %cst_19 = arith.constant 0.000000e+00 : f32
    %81 = vector.broadcast %cst_19 : f32 to vector<8x128xf32>
    %82 = arith.maximumf %80, %81 : vector<8x128xf32>
    %83 = vector.broadcast %53 : vector<8x1xf32> to vector<8x128xf32>
    %84 = vector.broadcast %35 : vector<1x128xf32> to vector<8x128xf32>
    %85 = arith.minimumf %83, %84 : vector<8x128xf32>
    %86 = vector.broadcast %47 : vector<8x1xf32> to vector<8x128xf32>
    %87 = vector.broadcast %29 : vector<1x128xf32> to vector<8x128xf32>
    %88 = arith.maximumf %86, %87 : vector<8x128xf32>
    %89 = arith.subf %85, %88 : vector<8x128xf32>
    %cst_20 = arith.constant 0.000000e+00 : f32
    %90 = vector.broadcast %cst_20 : f32 to vector<8x128xf32>
    %91 = arith.maximumf %89, %90 : vector<8x128xf32>
    %92 = arith.mulf %82, %91 : vector<8x128xf32>
    %93 = vector.broadcast %54 : vector<8x1xf32> to vector<8x128xf32>
    %94 = vector.broadcast %36 : vector<1x128xf32> to vector<8x128xf32>
    %95 = arith.addf %93, %94 : vector<8x128xf32>
    %96 = arith.subf %95, %92 : vector<8x128xf32>
    %97 = tpu.reciprocal %96 {approx = true} : vector<8x128xf32> -> vector<8x128xf32>
    %98 = arith.mulf %92, %97 : vector<8x128xf32>
    %99 = vector.broadcast %50 : vector<8x1xf32> to vector<8x128xf32>
    %100 = vector.broadcast %32 : vector<1x128xf32> to vector<8x128xf32>
    %101 = arith.maximumf %99, %100 : vector<8x128xf32>
    %102 = vector.broadcast %44 : vector<8x1xf32> to vector<8x128xf32>
    %103 = vector.broadcast %26 : vector<1x128xf32> to vector<8x128xf32>
    %104 = arith.minimumf %102, %103 : vector<8x128xf32>
    %105 = arith.subf %101, %104 : vector<8x128xf32>
    %106 = vector.broadcast %53 : vector<8x1xf32> to vector<8x128xf32>
    %107 = vector.broadcast %35 : vector<1x128xf32> to vector<8x128xf32>
    %108 = arith.maximumf %106, %107 : vector<8x128xf32>
    %109 = vector.broadcast %47 : vector<8x1xf32> to vector<8x128xf32>
    %110 = vector.broadcast %29 : vector<1x128xf32> to vector<8x128xf32>
    %111 = arith.minimumf %109, %110 : vector<8x128xf32>
    %112 = arith.subf %108, %111 : vector<8x128xf32>
    %cst_21 = arith.constant 1.000000e+00 : f32
    %113 = vector.broadcast %cst_21 : f32 to vector<8x128xf32>
    %114 = arith.subf %98, %113 : vector<8x128xf32>
    %115 = arith.mulf %105, %112 : vector<8x128xf32>
    %116 = tpu.reciprocal %115 {approx = true} : vector<8x128xf32> -> vector<8x128xf32>
    %117 = arith.mulf %96, %116 : vector<8x128xf32>
    %118 = arith.addf %114, %117 : vector<8x128xf32>
    %119 = arith.addf %17, %73 : vector<8x128xf32>
    %120 = arith.subf %119, %118 : vector<8x128xf32>
    %c0_22 = arith.constant 0 : index
    %c0_23 = arith.constant 0 : index
    %c0_24 = arith.constant 0 : index
    %121 = vector.load %arg5[%c0_22, %c0_23, %c0_24] : memref<1x8x128xf32, #tpu.memory_space<vmem>>, vector<1x8x128xf32>
    %122 = vector.shape_cast %121 : vector<1x8x128xf32> to vector<8x128xf32>
    %123 = vector.shape_cast %120 : vector<8x128xf32> to vector<1x8x128xf32>
    tpu.vector_store %arg5[%c0_22, %c0_23, %c0_24], %123 {strides = array<i32>} : memref<1x8x128xf32, #tpu.memory_space<vmem>>, vector<1x8x128xf32>,
    return
  }
  func.func @transform_0(%arg0: i32, %arg1: i32) -> (i32, i32, i32) {
    %c0_i32 = arith.constant 0 : i32
    %c0_i32_0 = arith.constant 0 : i32
    return %arg0, %arg1, %c0_i32 : i32, i32, i32
  }
  func.func @transform_1(%arg0: i32, %arg1: i32) -> (i32, i32, i32) {
    %c0_i32 = arith.constant 0 : i32
    %c0_i32_0 = arith.constant 0 : i32
    %c0_i32_1 = arith.constant 0 : i32
    return %arg0, %c0_i32, %c0_i32_0 : i32, i32, i32
  }
  func.func @transform_2(%arg0: i32, %arg1: i32) -> (i32, i32, i32) {
    %c0_i32 = arith.constant 0 : i32
    %c0_i32_0 = arith.constant 0 : i32
    %c0_i32_1 = arith.constant 0 : i32
    return %arg0, %c0_i32, %c0_i32_0 : i32, i32, i32
  }
  func.func @transform_3(%arg0: i32, %arg1: i32) -> (i32, i32, i32) {
    %c0_i32 = arith.constant 0 : i32
    %c0_i32_0 = arith.constant 0 : i32
    return %arg0, %arg1, %c0_i32 : i32, i32, i32
  }
}

</mosaic_0001>

<bundles_post_ra>
// kernel: _cost.1
= control target key start
LH: loop header
LB: loop body
LE: loop exit
PB: predicated region body
PF: predicated region fallthrough
CT: control target
= control target key end

     0   :  { %8 = vsyncpa [#allocation3], 0  ;;  %s878_s0 = inlined_call_operand.vmem [shape: f32[2,8,20], index: 0, kind: input, shape index: {}]   ;;  %s879_s1 = inlined_call_operand.vmem [shape: f32[2,4,128], index: 1, kind: input, shape index: {}]   ;;  %s880_s2 = inlined_call_operand.vmem [shape: bf16[2,16,128], index: 2, kind: input, shape index: {}]   ;;  %s881_s3 = inlined_call_operand.hbm [shape: f32[2,8,128], index: 3, kind: output, shape index: {}]  }
   0x1   :  { %10 = vsyncpa [#allocation3 + $0x1], 0  ;;  %s754_s12 = smov 0   ;;  %s756_s13 = smov 0  }
   0x2   :  { %s758_s14 = smov 0   ;;  %s760_s15 = smov 0  }
   0x3   :  { %s762_s16 = smov 0   ;;  %s764_s17 = smov 0  }
   0x4 LB: > { %s540_s18 = sadd.s32 4294967295, %s723_s17   ;;  %s541_s19 = sadd.s32 4294967294, %s723_s17   ;;  %s723_s17 = sphi %s764_s17, %s16_s17   ;;  %s719_s16 = sphi %s762_s16, %s888_s16   ;;  %s715_s15 = sphi %s760_s15, %s887_s15   ;;  %s711_s14 = sphi %s758_s14, %s886_s14   ;;  %s707_s13 = sphi %s756_s13, %s885_s13   ;;  %s703_s12 = sphi %s754_s12, %s884_s12  }
   0x5   : > { %s28_s20 = sadd.s32 1, %s719_s16  ;;  %s117_s21 = sadd.s32 1, %s711_s14 }
   0x6   : > { %p30_p0 = scmp.ge.s32.totalorder %s28_s20, 2  ;;  %p127_p1 = scmp.ne.s32.totalorder %s711_s14, %s707_s13 }
   0x7   : > { %p128_p2 = scmp.eq.s32.totalorder %s540_s18, 1  ;;  %p133_p3 = scmp.ne.s32.totalorder %s707_s13, %s703_s12 }
   0x8   : > { %s890_s20 = smov (%p30_p0, %s28_s20), 0  ;;  %p134_p5 = scmp.eq.s32.totalorder %s541_s19, 1 }
   0x9   : > { %p794_p4 = por %p128_p2, %p127_p1  ;;  %s112_s23 = ssub.s32 %s719_s16, %s890_s20 }
   0xa   : > { %p544_p6 = scmp.ge.s32.totalorder %s723_s17, 1  ;;  %p115_p7 = scmp.eq.s32.totalorder %s112_s23, 0 }
   0xb   : > { %p801_p8 = por %p134_p5, %p133_p3  ;;  %p177_p9 = scmp.lt.s32.totalorder %s723_s17, 3 }
   0xc   : > { %s807_s25 = scalar_select %p115_p7, %s711_s14, %s117_s21  }
   0xd   : > { %p178_p10 = pnand %p544_p6, %p177_p9 }
   0xe   : > { %p212_p11 = scmp.lt.s32.totalorder (!%p178_p10), %s715_s15, 1  ;;  %s725_s4 = smov (!%p178_p10), 126  }
   0xf   : > { %181 = sbr.rel (%p178_p10) target bundleno = 550 (0x226), region = 32  ;;  %s726_s5 = smov (!%p178_p10), 127  }
  0x10   : > { %s209_s19 = sand.u32 (!%p178_p10), 1, %s707_s13   ;;  %s554_s23 = sshll.u32 (!%p178_p10), %s715_s15, 7 }
  0x11   : > { %s545_s21 = sshll.u32 (!%p178_p10), %s209_s19, 3 }
  0x14   : > { %s811_s26 = scalar_select %p212_p11, %s715_s15, 1  ;;  %vm230_vm0 = vcmask 130048   ;;  %v727_v8 = vmov 0.0   ;;  %vm728_vm1 = vmmov 0   ;;  %v729_v13 = vmov 16  }
  0x15   : > { %560 = vmatprep.subr.bf16.mxu0 %v727_v8  ;;  %562 = vmatprep.mubr.msk.bf16.mxu0 %vm728_vm1, %v727_v8  ;;  %v730_v14 = vmov 17   ;;  %v731_v15 = vmov 18   ;;  %v732_v18 = vmov 19   ;;  %v273_v25 = vlaneseq  ;;  %s431_s15 = scalar_lea.sflag [#allocation3], %s209_s19 }
  0x16   : > { %s546_s27 = sshll.u32 %s811_s26, 3  ;;  %630 = vset.pattern.permute.xlu1 %v729_v13  ;;  %629 = vset.pattern.permute.xlu0 %v729_v13  ;;  %s547_s9 = sshll.u32 %s811_s26, 2 }
  0x17   : > { %s218_s30 = scalar_lea.vmem %s878_s0, %s546_s27  ;;  %s227_s8 = scalar_lea.vmem %s880_s2, %s546_s27  ;;  %v274_v28 = vshrl.u32 %v273_v25, 7 }
  0x18   : > { %v229_v0 = vld [vmem:[%s218_s30] sm:$0xff]  ;;  %s222_s18 = scalar_lea.vmem %s879_s1, %s547_s9  ;;  %s211_s26 = scalar_lea.vmem [#allocation2], %s545_s21 }
  0x19   : > { %v231_v1 = vsel %vm230_vm0, %v229_v0, -inf  ;;  %v257_v2 = vmul.f32 0.5, %v229_v0  ;;  %v638_v9 = vld [vmem:[%s227_s8] sm:$0xff]   ;;  %v275_v31 = vsub.s32 0, %v274_v28  ;;  %v285_v33 = vsub.s32 1, %v274_v28  ;;  %s445_s27 = sshll.u32 %s211_s26, 4  ;;  %s832_s30 = scalar_lea.hbm %s881_s3, %s554_s23  ;;  %s834_s27 = int_to_ptr.vmem [resolvable:$true] %s445_s27 }
  0x1a   : > { %232 = vmax.xlane.f32.xlu0 %v231_v1  ;;  %561 = vmatpush3.bf16.msra.mxu0 %v638_v9  ;;  %v246_v23 = vld [vmem:[%s222_s18] sm:$0xf]  ;;  %v296_v48 = vsub.s32 2, %v274_v28 }
  0x1b   : > { %259 = vrot.lane.b32.xlu1 %v257_v2, %s725_s4  ;;  %v247_v24 = vmul.f32 0.5, %v246_v23  ;;  %v254_v40 = vrot.slane %v246_v23, 1  ;;  %v276_v1 = vrot.slane %v246_v23, %v275_v31  ;;  %v286_v2 = vrot.slane %v246_v23, %v285_v33  ;;  %s647_s4 = scalar_lea.vmem %s834_s27, 128 }
  0x1c   : > { %p648_p12 = scmp.ne.s32.totalorder %s834_s27, %s647_s4 }
  0x1d   : > { %v249_v27 = vrot.slane %v247_v24, 2  ;;  %v256_v47 = vmul.f32 %v254_v40, %v246_v23 }
  0x1e   : > { %p649_p13 = pnand %p648_p12, %p794_p4 }
  0x1f   : > { %265 = vrot.lane.b32.xlu1 %v229_v0, %s726_s5  ;;  %v251_v30 = vsub.f32 %v246_v23, %v249_v27  ;;  %v252_v32 = vadd.f32 %v249_v27, %v246_v23  ;;  %v363_v51 = vrot.slane %v256_v47, %v296_v48  ;;  %s733_s5 = smov [#allocation2]  }
  0x20   : > { %p650_p0 = pneg %p649_p13  ;;  %s651_s6 = sshll.u32 %s733_s5, 4  ;;  %s652_s6 = int_to_ptr.vmem [resolvable:$false] %s651_s6 }
  0x21   : > { %v330_v34 = vrot.slane %v251_v30, %v275_v31  ;;  %v341_v35 = vrot.slane %v252_v32, %v285_v33  ;;  %v350_v36 = vrot.slane %v251_v30, %v285_v33  ;;  %v320_v37 = vrot.slane %v252_v32, %v275_v31  ;;  %s653_s7 = scalar_lea.vmem %s652_s6, 256  ;;  %p654_p1 = scmp.lt.s32.totalorder %s834_s27, %s652_s6 }
  0x22   : > { %p655_p2 = scmp.lt.s32.totalorder %s653_s7, %s647_s4 }
  0x24   : > { %p656_p3 = por %p655_p2, %p654_p1 }
  0x26   : > { %p657_p5 = pnand %p656_p3, %p650_p0 }
  0x8d   : > { %v260_v10 = vpop.permute.xlu1 %259 }
  0x8e   : > { %v262_v11 = vsub.f32 %v229_v0, %v260_v10  ;;  %v263_v12 = vadd.f32 %v260_v10, %v229_v0 }
  0x90   : > { %324 = vperm.xlu1 %630, %v262_v11  }
  0x91   : > { %v266_v16 = vpop.permute.xlu1 %265 }
  0x92   : > { %v268_v17 = vmul.f32 %v266_v16, %v229_v0 }
  0x94   : > { %631 = vset.pattern.permute.xlu1 %v730_v14 }
  0x95   : > { %335 = vperm.xlu1 %631, %v263_v12  }
  0x99   : > { %344 = vperm.xlu1 %631, %v262_v11  }
  0x9d   : > { %632 = vset.pattern.permute.xlu1 %v731_v15 }
  0x9e   : > { %357 = vperm.xlu1 %632, %v268_v17  }
  0xa2   : > { %633 = vset.pattern.permute.xlu1 %v729_v13 }
  0xa3   : > { %v233_v3 = vpop.xlane.xlu0 %232  ;;  %270 = vperm.xlu1 %633, %v229_v0  }
  0xa4   : > { %v234_v4 = vsub.f32 %v229_v0, %v233_v3 }
  0xa6   : > { %v235_v5 = vmul.f32 1.442695, %v234_v4 }
  0xa7   : > { %634 = vset.pattern.permute.xlu1 %v730_v14 }
  0xa8   : > { %639 = vpow2.f32 %v235_v5  ;;  %280 = vperm.xlu1 %634, %v229_v0  }
  0xac   : > { %635 = vset.pattern.permute.xlu1 %v731_v15 }
  0xad   : > { %291 = vperm.xlu1 %635, %v229_v0  }
  0xb1   : > { %636 = vset.pattern.permute.xlu1 %v732_v18 }
  0xb2   : > { %302 = vperm.xlu1 %636, %v229_v0  }
  0xb5   : > { %v640_v6 = vpop.eup %639 }
  0xb6   : > { %v237_v7 = vsel %vm230_vm0, %v640_v6, 0.0 }
  0xb7   : > { %238 = vadd.xlane.f32.xlu0 %v237_v7  ;;  %v307_v7 = vsub.s32 3, %v274_v28 }
  0xb9   : > { %v308_v11 = vrot.slane %v246_v23, %v307_v7 }
  0xcd   : > { %314 = vperm.xlu0 %629, %v263_v12  }
  0xd1   : > { %637 = vset.pattern.permute.xlu0 %v731_v15 }
 0x10b   : > { %v325_v26 = vpop.permute.xlu1 %324 }
 0x10c   : > { %v331_v41 = vmax.f32 %v325_v26, %v330_v34  ;;  %v369_v53 = vmin.f32 %v325_v26, %v330_v34 }
 0x110   : > { %v336_v29 = vpop.permute.xlu1 %335 }
 0x111   : > { %v342_v42 = vmin.f32 %v336_v29, %v341_v35  ;;  %v371_v55 = vmax.f32 %v336_v29, %v341_v35 }
 0x114   : > { %v345_v38 = vpop.permute.xlu1 %344 }
 0x115   : > { %v351_v43 = vmax.f32 %v345_v38, %v350_v36  ;;  %v372_v56 = vmin.f32 %v345_v38, %v350_v36 }
 0x117   : > { %v352_v45 = vsub.f32 %v342_v42, %v351_v43  ;;  %v373_v60 = vsub.f32 %v371_v55, %v372_v56 }
 0x119   : > { %v353_v49 = vmax.f32 %v352_v45, 0.0  ;;  %v358_v52 = vpop.permute.xlu1 %357 }
 0x11a   : > { %v364_v58 = vadd.f32 %v363_v51, %v358_v52 }
 0x11e   : > { %v271_v59 = vpop.permute.xlu1 %270 }
 0x11f   : > { %v277_v4 = vsub.f32 %v271_v59, %v276_v1 }
 0x121   : > { %v278_v8 = vand.u32 2147483647, %v277_v4 }
 0x123   : > { %v281_v63 = vpop.permute.xlu1 %280 }
 0x124   : > { %v287_v5 = vsub.f32 %v281_v63, %v286_v2 }
 0x126   : > { %v288_v9 = vand.u32 2147483647, %v287_v5 }
 0x128   : > { %v292_v3 = vpop.permute.xlu1 %291  ;;  %v289_v14 = vadd.f32 %v288_v9, %v278_v8 }
 0x12d   : > { %v303_v12 = vpop.permute.xlu1 %302 }
 0x12e   : > { %v309_v16 = vsub.f32 %v303_v12, %v308_v11 }
 0x140   : > { %v239_v19 = vpop.xlane.xlu0 %238 }
 0x141   : > { %641 = vrcp.f32 %v239_v19 }
 0x148   : > { %v315_v39 = vpop.permute.xlu0 %314 }
 0x149   : > { %v321_v44 = vmin.f32 %v315_v39, %v320_v37  ;;  %v368_v54 = vmax.f32 %v315_v39, %v320_v37 }
 0x14b   : > { %v332_v46 = vsub.f32 %v321_v44, %v331_v41  ;;  %v370_v61 = vsub.f32 %v368_v54, %v369_v53 }
 0x14d   : > { %v333_v50 = vmax.f32 %v332_v46, 0.0  ;;  %v375_v0 = vmul.f32 %v373_v60, %v370_v61 }
 0x14e   : > { %v642_v20 = vpop.eup %641 }
 0x14f   : > { %v242_v21 = vmul.f32 %v642_v20, %v640_v6  ;;  %v354_v57 = vmul.f32 %v353_v49, %v333_v50  ;;  %v297_v6 = vrot.slane %v246_v23, %v296_v48  ;;  %v310_v20 = vand.u32 2147483647, %v309_v16 }
 0x151   : > { %v243_v22 = vpack.c.bf16 %v242_v21, %v242_v21  ;;  %v365_v62 = vsub.f32 %v364_v58, %v354_v57  ;;  %v298_v10 = vsub.f32 %v292_v3, %v297_v6 }
 0x153   : > { %563 = vmatmul.mubr.msk.bf16.vlgmr.msra.gmra.mxu0 %vm230_vm0, %v243_v22  ;;  %643 = vrcp.f32 %v365_v62  ;;  %v299_v15 = vand.u32 2147483647, %v298_v10 }
 0x154   : > { %645 = vrcp.f32 %v375_v0 }
 0x155   : > { %v300_v19 = vadd.f32 %v299_v15, %v289_v14 }
 0x157   : > { %v311_v24 = vadd.f32 %v310_v20, %v300_v19 }
 0x160   : > { %v644_v13 = vpop.eup %643 }
 0x161   : > { %v367_v17 = vmul.f32 %v644_v13, %v354_v57  ;;  %v646_v18 = vpop.eup %645 }
 0x162   : > { %v377_v21 = vmul.f32 %v646_v18, %v365_v62 }
 0x163   : > { %v550_v22 = vadd.f32 -1.0, %v367_v17 }
 0x165   : > { %v378_v23 = vadd.f32 %v550_v22, %v377_v21 }
 0x213   : > { %v422_v25 = vpop.f32.mrf.mxu0 }
 0x214   : > { %v423_v26 = vadd.f32 %v422_v25, %v311_v24 }
 0x215   : > { %v564_v27 = vpop.f32.mrf.mxu0 }
 0x216   : > { %v428_v28 = vsub.f32 %v423_v26, %v378_v23 }
 0x217   : > { %v425_v29 = vpop.f32.mrf.mxu0 }
 0x218   : > { %429 = vst [vmem:[%s211_s26] sm:$0xff] %v428_v28 }
 0x219   : > { %v565_v30 = vpop.f32.mrf.mxu0 }
 0x21a   : > { %660 = shalt.err (!%p657_p5)
}
 0x21b   : > { %s661_s8 = scalar_lea.hbm %s832_s30, 128  ;;  %s665_s11 = scalar_lea.hbm %s881_s3, 256 }
 0x21c   : > { %p662_p6 = scmp.ne.s32.totalorder %s832_s30, %s661_s8  ;;  %p666_p10 = scmp.lt.s32.totalorder %s832_s30, %s881_s3 }
 0x21d   : > { %p667_p11 = scmp.lt.s32.totalorder %s665_s11, %s661_s8 }
 0x21e   : > { %p663_p7 = pnand %p662_p6, %p794_p4 }
 0x21f   : > { %p668_p12 = por %p667_p11, %p666_p10 }
 0x220   : > { %p664_p9 = pneg %p663_p7 }
 0x222   : > { %p669_p13 = pnand %p668_p12, %p664_p9 }
 0x224   : > { %672 = shalt.err (!%p669_p13)
}
 0x225   : > { %566 = dma.vmem_to_hbm [thread:$0]  (%p794_p4), %s834_s27, 128, %s832_s30, %s431_s15  }
 0x226 PF: > { %p572_p0 = scmp.ge.s32.totalorder %s723_s17, 2  ;;  %s457_s21 = sand.u32 1, %s703_s12  }
 0x227   : > { %s458_s23 = scalar_lea.sflag [#allocation3], %s457_s21 }
 0x228   : > { %p569_p1 = pnand %p572_p0, %p801_p8 }
 0x22a   : > { %p570_p2 = pneg %p569_p1 }
 0x22c   : > { %698 = dma.done.wait (%p570_p2), %s458_s23, 128  }
 0x22d   : > { %700 = vsyncadd (%p570_p2), %s458_s23, 4294967168  ;;  %s16_s17 = sadd.s32 1, %s723_s17   ;;  %s884_s12 = smov %s707_s13 }
 0x22e   : > { %p13_p3 = scmp.ge.s32.totalorder %s16_s17, 4   ;;  %s885_s13 = smov %s711_s14 }
 0x22f   : > { %s886_s14 = smov %s807_s25  ;;  %s887_s15 = smov %s719_s16 }
 0x230   : > { %s888_s16 = smov %s890_s20  ;;  %15 = sbr.rel (!%p13_p3) target bundleno = 4 (0x4), region = 73 }
 0x235   :  { %463 = vsyncpa [#allocation3], 1 }
 0x236   :  { %465 = vsyncpa [#allocation3 + $0x1], 1 }

</bundles_post_ra>
